<compile_context>
chip_gen: v5e
topology: v5e:2x2
jax: 0.10.0
libtpu: 0.0.40
codegen_flags: <defaults>
</compile_context>

<pallas_src>
import functools

import jax
import jax.numpy as jnp
from jax.experimental import pallas as pl
from jax.experimental.pallas import tpu as pltpu

_LANES = 128
_SUBLANES = 8


def _ceil_div(a, b):
    return -(-a // b)


def _round_up(a, b):
    return _ceil_div(a, b) * b


def adaptive_max_pool2d_kernel(x_ref, o_ref, hbuf_ref, *, H, W, OH, OW):
    """Separable adaptive max pool on one (H, W, TILE_NC) lane-dense tile.

    x_ref:    (H,  W,  TILE_NC) VMEM input block
    o_ref:    (OH, OW, TILE_NC) VMEM output block
    hbuf_ref: (OH, W,  TILE_NC) VMEM scratch (H already reduced)
    """
    # Pass 1: reduce along H (leading axis -> cheap full-slab slices).
    for i in range(OH):
        h0 = (i * H) // OH
        h1 = _ceil_div((i + 1) * H, OH)
        acc = x_ref[h0]                               # (W, TILE_NC)
        for h in range(h0 + 1, h1):
            acc = jnp.maximum(acc, x_ref[h])
        hbuf_ref[i] = acc

    # Pass 2: reduce along W, writing each pooled column directly (no stacks).
    for i in range(OH):
        row = hbuf_ref[i]                             # (W, TILE_NC)
        for j in range(OW):
            w0 = (j * W) // OW
            w1 = _ceil_div((j + 1) * W, OW)
            o_ref[i, j:j + 1, :] = jnp.max(row[w0:w1, :], axis=0, keepdims=True)


def adaptive_max_pool2d(x, output_size):
    """x: (N, C, H, W) -> (N, C, OH, OW), matching nn.AdaptiveMaxPool2d."""
    N, C, H, W = x.shape
    OH, OW = output_size
    NC = N * C
    dtype_bytes = jnp.dtype(x.dtype).itemsize

    # --- tile sizing (per 128-lane group, sublane-padded VMEM bytes) ------
    #   2x double-buffered input tile + 2x double-buffered output tile
    #   + 1x single-buffered scratch row buffer.
    per_lane_group = dtype_bytes * _LANES * (
        2 * H * _round_up(W, _SUBLANES)
        + 2 * OH * _round_up(OW, _SUBLANES)
        + OH * _round_up(W, _SUBLANES)
    )
    budget = 24 << 20  # conservative: fits comfortably in v7x's 64 MiB VMEM
    max_lane_groups = max(1, budget // per_lane_group)
    tile_nc = min(max_lane_groups, _ceil_div(NC, _LANES)) * _LANES

    # Pad NC to a multiple of the tile so both input and output stay lane-dense.
    nc_pad = _round_up(NC, tile_nc)
    grid = (nc_pad // tile_nc,)

    vmem_need = per_lane_group * (tile_nc // _LANES)
    vmem_limit = int(min(64 << 20, max(16 << 20, 2 * vmem_need)))

    # --- layout: fold (N, C) onto the 128-lane axis -----------------------
    # TODO(synk): fold this HBM transpose into the kernel (NCHW-natural DMA +
    # in-VMEM pltpu.einshape) to cut HBM traffic further, mainly on v5e.
    x_hwc = jnp.transpose(x, (2, 3, 0, 1)).reshape(H, W, NC)
    if nc_pad != NC:
        x_hwc = jnp.pad(x_hwc, ((0, 0), (0, 0), (0, nc_pad - NC)))

    out_hwc = pl.pallas_call(
        functools.partial(adaptive_max_pool2d_kernel, H=H, W=W, OH=OH, OW=OW),
        out_shape=jax.ShapeDtypeStruct((OH, OW, nc_pad), x.dtype),
        grid=grid,
        in_specs=[pl.BlockSpec((H, W, tile_nc), lambda k: (0, 0, k))],
        out_specs=pl.BlockSpec((OH, OW, tile_nc), lambda k: (0, 0, k)),
        scratch_shapes=[pltpu.VMEM((OH, W, tile_nc), x.dtype)],
        compiler_params=pltpu.CompilerParams(
            dimension_semantics=("parallel",),
            vmem_limit_bytes=vmem_limit,
        ),
    )(x_hwc)

    out = out_hwc[:, :, :NC].reshape(OH, OW, N, C)
    return jnp.transpose(out, (2, 3, 0, 1))


class CustomModelPallas:
    """Mirror of the PyTorch CustomModel: AdaptiveMaxPool2d((5, 7))."""

    def __init__(self):
        self.output_size = (5, 7)

    def __call__(self, x):
        return adaptive_max_pool2d(x, self.output_size)


def _reference_adaptive_max_pool2d(x, output_size):
    # Pure-JAX reference for a sanity check.
    N, C, H, W = x.shape
    OH, OW = output_size
    out = jnp.zeros((N, C, OH, OW), x.dtype)
    for i in range(OH):
        h0, h1 = (i * H) // OH, _ceil_div((i + 1) * H, OH)
        for j in range(OW):
            w0, w1 = (j * W) // OW, _ceil_div((j + 1) * W, OW)
            out = out.at[:, :, i, j].set(jnp.max(x[:, :, h0:h1, w0:w1], axis=(2, 3)))
    return out


if __name__ == "__main__":
    key = jax.random.PRNGKey(0)
    # Same shape as the PyTorch test: input_x_shape = [1, 64, 8, 9]
    x = jax.random.normal(key, (1, 64, 8, 9), dtype=jnp.float32)

    model = CustomModelPallas()
    out = model(x)
    out = jax.block_until_ready(out)

    assert out.shape == (1, 64, 5, 7), out.shape

    ref = _reference_adaptive_max_pool2d(x, (5, 7))
    assert jnp.allclose(out, ref), "Pallas output mismatch vs reference"

    print("KERNEL_OK")
</pallas_src>

<mosaic_0001>
module attributes {stable_mosaic.version = 11 : i64} {
  func.func @adaptive_max_pool2d_kernel(%arg0: i32, %arg1: memref<8x9x128xf32, #tpu.memory_space<vmem>>, %arg2: memref<5x7x128xf32, #tpu.memory_space<vmem>>, %arg3: memref<5x9x128xf32, #tpu.memory_space<vmem>>) attributes {dimension_semantics = [#tpu.dimension_semantics<parallel>], iteration_bounds = array<i64: 1>, scalar_prefetch = 0 : i64, scratch_operands = 1 : i64, tpu.core_type = #tpu.core_type<tc>, window_params = [{transform_indices = @transform_0, window_bounds = array<i64: 8, 9, 128>}, {transform_indices = @transform_1, window_bounds = array<i64: 5, 7, 128>}]} {
    %c0 = arith.constant 0 : index
    %c0_0 = arith.constant 0 : index
    %c0_1 = arith.constant 0 : index
    %0 = vector.load %arg1[%c0, %c0_0, %c0_1] : memref<8x9x128xf32, #tpu.memory_space<vmem>>, vector<1x9x128xf32>
    %1 = vector.shape_cast %0 : vector<1x9x128xf32> to vector<9x128xf32>
    %c1 = arith.constant 1 : index
    %c0_2 = arith.constant 0 : index
    %c0_3 = arith.constant 0 : index
    %2 = vector.load %arg1[%c1, %c0_2, %c0_3] : memref<8x9x128xf32, #tpu.memory_space<vmem>>, vector<1x9x128xf32>
    %3 = vector.shape_cast %2 : vector<1x9x128xf32> to vector<9x128xf32>
    %4 = arith.maximumf %1, %3 : vector<9x128xf32>
    %c0_4 = arith.constant 0 : index
    %c0_5 = arith.constant 0 : index
    %c0_6 = arith.constant 0 : index
    %5 = vector.load %arg3[%c0_4, %c0_5, %c0_6] : memref<5x9x128xf32, #tpu.memory_space<vmem>>, vector<1x9x128xf32>
    %6 = vector.shape_cast %5 : vector<1x9x128xf32> to vector<9x128xf32>
    %7 = vector.shape_cast %4 : vector<9x128xf32> to vector<1x9x128xf32>
    tpu.vector_store %arg3[%c0_4, %c0_5, %c0_6], %7 {strides = array<i32>} : memref<5x9x128xf32, #tpu.memory_space<vmem>>, vector<1x9x128xf32>,
    %c1_7 = arith.constant 1 : index
    %c0_8 = arith.constant 0 : index
    %c0_9 = arith.constant 0 : index
    %8 = vector.load %arg1[%c1_7, %c0_8, %c0_9] : memref<8x9x128xf32, #tpu.memory_space<vmem>>, vector<1x9x128xf32>
    %9 = vector.shape_cast %8 : vector<1x9x128xf32> to vector<9x128xf32>
    %c2 = arith.constant 2 : index
    %c0_10 = arith.constant 0 : index
    %c0_11 = arith.constant 0 : index
    %10 = vector.load %arg1[%c2, %c0_10, %c0_11] : memref<8x9x128xf32, #tpu.memory_space<vmem>>, vector<1x9x128xf32>
    %11 = vector.shape_cast %10 : vector<1x9x128xf32> to vector<9x128xf32>
    %12 = arith.maximumf %9, %11 : vector<9x128xf32>
    %c3 = arith.constant 3 : index
    %c0_12 = arith.constant 0 : index
    %c0_13 = arith.constant 0 : index
    %13 = vector.load %arg1[%c3, %c0_12, %c0_13] : memref<8x9x128xf32, #tpu.memory_space<vmem>>, vector<1x9x128xf32>
    %14 = vector.shape_cast %13 : vector<1x9x128xf32> to vector<9x128xf32>
    %15 = arith.maximumf %12, %14 : vector<9x128xf32>
    %c1_14 = arith.constant 1 : index
    %c0_15 = arith.constant 0 : index
    %c0_16 = arith.constant 0 : index
    %16 = vector.load %arg3[%c1_14, %c0_15, %c0_16] : memref<5x9x128xf32, #tpu.memory_space<vmem>>, vector<1x9x128xf32>
    %17 = vector.shape_cast %16 : vector<1x9x128xf32> to vector<9x128xf32>
    %18 = vector.shape_cast %15 : vector<9x128xf32> to vector<1x9x128xf32>
    tpu.vector_store %arg3[%c1_14, %c0_15, %c0_16], %18 {strides = array<i32>} : memref<5x9x128xf32, #tpu.memory_space<vmem>>, vector<1x9x128xf32>,
    %c3_17 = arith.constant 3 : index
    %c0_18 = arith.constant 0 : index
    %c0_19 = arith.constant 0 : index
    %19 = vector.load %arg1[%c3_17, %c0_18, %c0_19] : memref<8x9x128xf32, #tpu.memory_space<vmem>>, vector<1x9x128xf32>
    %20 = vector.shape_cast %19 : vector<1x9x128xf32> to vector<9x128xf32>
    %c4 = arith.constant 4 : index
    %c0_20 = arith.constant 0 : index
    %c0_21 = arith.constant 0 : index
    %21 = vector.load %arg1[%c4, %c0_20, %c0_21] : memref<8x9x128xf32, #tpu.memory_space<vmem>>, vector<1x9x128xf32>
    %22 = vector.shape_cast %21 : vector<1x9x128xf32> to vector<9x128xf32>
    %23 = arith.maximumf %20, %22 : vector<9x128xf32>
    %c2_22 = arith.constant 2 : index
    %c0_23 = arith.constant 0 : index
    %c0_24 = arith.constant 0 : index
    %24 = vector.load %arg3[%c2_22, %c0_23, %c0_24] : memref<5x9x128xf32, #tpu.memory_space<vmem>>, vector<1x9x128xf32>
    %25 = vector.shape_cast %24 : vector<1x9x128xf32> to vector<9x128xf32>
    %26 = vector.shape_cast %23 : vector<9x128xf32> to vector<1x9x128xf32>
    tpu.vector_store %arg3[%c2_22, %c0_23, %c0_24], %26 {strides = array<i32>} : memref<5x9x128xf32, #tpu.memory_space<vmem>>, vector<1x9x128xf32>,
    %c4_25 = arith.constant 4 : index
    %c0_26 = arith.constant 0 : index
    %c0_27 = arith.constant 0 : index
    %27 = vector.load %arg1[%c4_25, %c0_26, %c0_27] : memref<8x9x128xf32, #tpu.memory_space<vmem>>, vector<1x9x128xf32>
    %28 = vector.shape_cast %27 : vector<1x9x128xf32> to vector<9x128xf32>
    %c5 = arith.constant 5 : index
    %c0_28 = arith.constant 0 : index
    %c0_29 = arith.constant 0 : index
    %29 = vector.load %arg1[%c5, %c0_28, %c0_29] : memref<8x9x128xf32, #tpu.memory_space<vmem>>, vector<1x9x128xf32>
    %30 = vector.shape_cast %29 : vector<1x9x128xf32> to vector<9x128xf32>
    %31 = arith.maximumf %28, %30 : vector<9x128xf32>
    %c6 = arith.constant 6 : index
    %c0_30 = arith.constant 0 : index
    %c0_31 = arith.constant 0 : index
    %32 = vector.load %arg1[%c6, %c0_30, %c0_31] : memref<8x9x128xf32, #tpu.memory_space<vmem>>, vector<1x9x128xf32>
    %33 = vector.shape_cast %32 : vector<1x9x128xf32> to vector<9x128xf32>
    %34 = arith.maximumf %31, %33 : vector<9x128xf32>
    %c3_32 = arith.constant 3 : index
    %c0_33 = arith.constant 0 : index
    %c0_34 = arith.constant 0 : index
    %35 = vector.load %arg3[%c3_32, %c0_33, %c0_34] : memref<5x9x128xf32, #tpu.memory_space<vmem>>, vector<1x9x128xf32>
    %36 = vector.shape_cast %35 : vector<1x9x128xf32> to vector<9x128xf32>
    %37 = vector.shape_cast %34 : vector<9x128xf32> to vector<1x9x128xf32>
    tpu.vector_store %arg3[%c3_32, %c0_33, %c0_34], %37 {strides = array<i32>} : memref<5x9x128xf32, #tpu.memory_space<vmem>>, vector<1x9x128xf32>,
    %c6_35 = arith.constant 6 : index
    %c0_36 = arith.constant 0 : index
    %c0_37 = arith.constant 0 : index
    %38 = vector.load %arg1[%c6_35, %c0_36, %c0_37] : memref<8x9x128xf32, #tpu.memory_space<vmem>>, vector<1x9x128xf32>
    %39 = vector.shape_cast %38 : vector<1x9x128xf32> to vector<9x128xf32>
    %c7 = arith.constant 7 : index
    %c0_38 = arith.constant 0 : index
    %c0_39 = arith.constant 0 : index
    %40 = vector.load %arg1[%c7, %c0_38, %c0_39] : memref<8x9x128xf32, #tpu.memory_space<vmem>>, vector<1x9x128xf32>
    %41 = vector.shape_cast %40 : vector<1x9x128xf32> to vector<9x128xf32>
    %42 = arith.maximumf %39, %41 : vector<9x128xf32>
    %c4_40 = arith.constant 4 : index
    %c0_41 = arith.constant 0 : index
    %c0_42 = arith.constant 0 : index
    %43 = vector.load %arg3[%c4_40, %c0_41, %c0_42] : memref<5x9x128xf32, #tpu.memory_space<vmem>>, vector<1x9x128xf32>
    %44 = vector.shape_cast %43 : vector<1x9x128xf32> to vector<9x128xf32>
    %45 = vector.shape_cast %42 : vector<9x128xf32> to vector<1x9x128xf32>
    tpu.vector_store %arg3[%c4_40, %c0_41, %c0_42], %45 {strides = array<i32>} : memref<5x9x128xf32, #tpu.memory_space<vmem>>, vector<1x9x128xf32>,
    %c0_43 = arith.constant 0 : index
    %c0_44 = arith.constant 0 : index
    %c0_45 = arith.constant 0 : index
    %46 = vector.load %arg3[%c0_43, %c0_44, %c0_45] : memref<5x9x128xf32, #tpu.memory_space<vmem>>, vector<1x9x128xf32>
    %47 = vector.shape_cast %46 : vector<1x9x128xf32> to vector<9x128xf32>
    %48 = vector.extract_strided_slice %47 {offsets = [0, 0], sizes = [2, 128], strides = [1, 1]} : vector<9x128xf32> to vector<2x128xf32>
    %cst = arith.constant dense<0xFF800000> : vector<128xf32>
    %49 = vector.multi_reduction <maximumf>, %48, %cst [0] : vector<2x128xf32> to vector<128xf32>
    %50 = vector.shape_cast %49 : vector<128xf32> to vector<1x128xf32>
    %c0_46 = arith.constant 0 : index
    %c0_47 = arith.constant 0 : index
    %c0_48 = arith.constant 0 : index
    %51 = vector.load %arg2[%c0_46, %c0_47, %c0_48] : memref<5x7x128xf32, #tpu.memory_space<vmem>>, vector<1x1x128xf32>
    %52 = vector.shape_cast %51 : vector<1x1x128xf32> to vector<1x128xf32>
    %53 = vector.shape_cast %50 : vector<1x128xf32> to vector<1x1x128xf32>
    tpu.vector_store %arg2[%c0_46, %c0_47, %c0_48], %53 {strides = array<i32>} : memref<5x7x128xf32, #tpu.memory_space<vmem>>, vector<1x1x128xf32>,
    %54 = vector.extract_strided_slice %47 {offsets = [1, 0], sizes = [2, 128], strides = [1, 1]} : vector<9x128xf32> to vector<2x128xf32>
    %cst_49 = arith.constant dense<0xFF800000> : vector<128xf32>
    %55 = vector.multi_reduction <maximumf>, %54, %cst_49 [0] : vector<2x128xf32> to vector<128xf32>
    %56 = vector.shape_cast %55 : vector<128xf32> to vector<1x128xf32>
    %c0_50 = arith.constant 0 : index
    %c1_51 = arith.constant 1 : index
    %c0_52 = arith.constant 0 : index
    %57 = vector.load %arg2[%c0_50, %c1_51, %c0_52] : memref<5x7x128xf32, #tpu.memory_space<vmem>>, vector<1x1x128xf32>
    %58 = vector.shape_cast %57 : vector<1x1x128xf32> to vector<1x128xf32>
    %59 = vector.shape_cast %56 : vector<1x128xf32> to vector<1x1x128xf32>
    tpu.vector_store %arg2[%c0_50, %c1_51, %c0_52], %59 {strides = array<i32>} : memref<5x7x128xf32, #tpu.memory_space<vmem>>, vector<1x1x128xf32>,
    %60 = vector.extract_strided_slice %47 {offsets = [2, 0], sizes = [2, 128], strides = [1, 1]} : vector<9x128xf32> to vector<2x128xf32>
    %cst_53 = arith.constant dense<0xFF800000> : vector<128xf32>
    %61 = vector.multi_reduction <maximumf>, %60, %cst_53 [0] : vector<2x128xf32> to vector<128xf32>
    %62 = vector.shape_cast %61 : vector<128xf32> to vector<1x128xf32>
    %c0_54 = arith.constant 0 : index
    %c2_55 = arith.constant 2 : index
    %c0_56 = arith.constant 0 : index
    %63 = vector.load %arg2[%c0_54, %c2_55, %c0_56] : memref<5x7x128xf32, #tpu.memory_space<vmem>>, vector<1x1x128xf32>
    %64 = vector.shape_cast %63 : vector<1x1x128xf32> to vector<1x128xf32>
    %65 = vector.shape_cast %62 : vector<1x128xf32> to vector<1x1x128xf32>
    tpu.vector_store %arg2[%c0_54, %c2_55, %c0_56], %65 {strides = array<i32>} : memref<5x7x128xf32, #tpu.memory_space<vmem>>, vector<1x1x128xf32>,
    %66 = vector.extract_strided_slice %47 {offsets = [3, 0], sizes = [3, 128], strides = [1, 1]} : vector<9x128xf32> to vector<3x128xf32>
    %cst_57 = arith.constant dense<0xFF800000> : vector<128xf32>
    %67 = vector.multi_reduction <maximumf>, %66, %cst_57 [0] : vector<3x128xf32> to vector<128xf32>
    %68 = vector.shape_cast %67 : vector<128xf32> to vector<1x128xf32>
    %c0_58 = arith.constant 0 : index
    %c3_59 = arith.constant 3 : index
    %c0_60 = arith.constant 0 : index
    %69 = vector.load %arg2[%c0_58, %c3_59, %c0_60] : memref<5x7x128xf32, #tpu.memory_space<vmem>>, vector<1x1x128xf32>
    %70 = vector.shape_cast %69 : vector<1x1x128xf32> to vector<1x128xf32>
    %71 = vector.shape_cast %68 : vector<1x128xf32> to vector<1x1x128xf32>
    tpu.vector_store %arg2[%c0_58, %c3_59, %c0_60], %71 {strides = array<i32>} : memref<5x7x128xf32, #tpu.memory_space<vmem>>, vector<1x1x128xf32>,
    %72 = vector.extract_strided_slice %47 {offsets = [5, 0], sizes = [2, 128], strides = [1, 1]} : vector<9x128xf32> to vector<2x128xf32>
    %cst_61 = arith.constant dense<0xFF800000> : vector<128xf32>
    %73 = vector.multi_reduction <maximumf>, %72, %cst_61 [0] : vector<2x128xf32> to vector<128xf32>
    %74 = vector.shape_cast %73 : vector<128xf32> to vector<1x128xf32>
    %c0_62 = arith.constant 0 : index
    %c4_63 = arith.constant 4 : index
    %c0_64 = arith.constant 0 : index
    %75 = vector.load %arg2[%c0_62, %c4_63, %c0_64] : memref<5x7x128xf32, #tpu.memory_space<vmem>>, vector<1x1x128xf32>
    %76 = vector.shape_cast %75 : vector<1x1x128xf32> to vector<1x128xf32>
    %77 = vector.shape_cast %74 : vector<1x128xf32> to vector<1x1x128xf32>
    tpu.vector_store %arg2[%c0_62, %c4_63, %c0_64], %77 {strides = array<i32>} : memref<5x7x128xf32, #tpu.memory_space<vmem>>, vector<1x1x128xf32>,
    %78 = vector.extract_strided_slice %47 {offsets = [6, 0], sizes = [2, 128], strides = [1, 1]} : vector<9x128xf32> to vector<2x128xf32>
    %cst_65 = arith.constant dense<0xFF800000> : vector<128xf32>
    %79 = vector.multi_reduction <maximumf>, %78, %cst_65 [0] : vector<2x128xf32> to vector<128xf32>
    %80 = vector.shape_cast %79 : vector<128xf32> to vector<1x128xf32>
    %c0_66 = arith.constant 0 : index
    %c5_67 = arith.constant 5 : index
    %c0_68 = arith.constant 0 : index
    %81 = vector.load %arg2[%c0_66, %c5_67, %c0_68] : memref<5x7x128xf32, #tpu.memory_space<vmem>>, vector<1x1x128xf32>
    %82 = vector.shape_cast %81 : vector<1x1x128xf32> to vector<1x128xf32>
    %83 = vector.shape_cast %80 : vector<1x128xf32> to vector<1x1x128xf32>
    tpu.vector_store %arg2[%c0_66, %c5_67, %c0_68], %83 {strides = array<i32>} : memref<5x7x128xf32, #tpu.memory_space<vmem>>, vector<1x1x128xf32>,
    %84 = vector.extract_strided_slice %47 {offsets = [7, 0], sizes = [2, 128], strides = [1, 1]} : vector<9x128xf32> to vector<2x128xf32>
    %cst_69 = arith.constant dense<0xFF800000> : vector<128xf32>
    %85 = vector.multi_reduction <maximumf>, %84, %cst_69 [0] : vector<2x128xf32> to vector<128xf32>
    %86 = vector.shape_cast %85 : vector<128xf32> to vector<1x128xf32>
    %c0_70 = arith.constant 0 : index
    %c6_71 = arith.constant 6 : index
    %c0_72 = arith.constant 0 : index
    %87 = vector.load %arg2[%c0_70, %c6_71, %c0_72] : memref<5x7x128xf32, #tpu.memory_space<vmem>>, vector<1x1x128xf32>
    %88 = vector.shape_cast %87 : vector<1x1x128xf32> to vector<1x128xf32>
    %89 = vector.shape_cast %86 : vector<1x128xf32> to vector<1x1x128xf32>
    tpu.vector_store %arg2[%c0_70, %c6_71, %c0_72], %89 {strides = array<i32>} : memref<5x7x128xf32, #tpu.memory_space<vmem>>, vector<1x1x128xf32>,
    %c1_73 = arith.constant 1 : index
    %c0_74 = arith.constant 0 : index
    %c0_75 = arith.constant 0 : index
    %90 = vector.load %arg3[%c1_73, %c0_74, %c0_75] : memref<5x9x128xf32, #tpu.memory_space<vmem>>, vector<1x9x128xf32>
    %91 = vector.shape_cast %90 : vector<1x9x128xf32> to vector<9x128xf32>
    %92 = vector.extract_strided_slice %91 {offsets = [0, 0], sizes = [2, 128], strides = [1, 1]} : vector<9x128xf32> to vector<2x128xf32>
    %cst_76 = arith.constant dense<0xFF800000> : vector<128xf32>
    %93 = vector.multi_reduction <maximumf>, %92, %cst_76 [0] : vector<2x128xf32> to vector<128xf32>
    %94 = vector.shape_cast %93 : vector<128xf32> to vector<1x128xf32>
    %c1_77 = arith.constant 1 : index
    %c0_78 = arith.constant 0 : index
    %c0_79 = arith.constant 0 : index
    %95 = vector.load %arg2[%c1_77, %c0_78, %c0_79] : memref<5x7x128xf32, #tpu.memory_space<vmem>>, vector<1x1x128xf32>
    %96 = vector.shape_cast %95 : vector<1x1x128xf32> to vector<1x128xf32>
    %97 = vector.shape_cast %94 : vector<1x128xf32> to vector<1x1x128xf32>
    tpu.vector_store %arg2[%c1_77, %c0_78, %c0_79], %97 {strides = array<i32>} : memref<5x7x128xf32, #tpu.memory_space<vmem>>, vector<1x1x128xf32>,
    %98 = vector.extract_strided_slice %91 {offsets = [1, 0], sizes = [2, 128], strides = [1, 1]} : vector<9x128xf32> to vector<2x128xf32>
    %cst_80 = arith.constant dense<0xFF800000> : vector<128xf32>
    %99 = vector.multi_reduction <maximumf>, %98, %cst_80 [0] : vector<2x128xf32> to vector<128xf32>
    %100 = vector.shape_cast %99 : vector<128xf32> to vector<1x128xf32>
    %c1_81 = arith.constant 1 : index
    %c1_82 = arith.constant 1 : index
    %c0_83 = arith.constant 0 : index
    %101 = vector.load %arg2[%c1_81, %c1_82, %c0_83] : memref<5x7x128xf32, #tpu.memory_space<vmem>>, vector<1x1x128xf32>
    %102 = vector.shape_cast %101 : vector<1x1x128xf32> to vector<1x128xf32>
    %103 = vector.shape_cast %100 : vector<1x128xf32> to vector<1x1x128xf32>
    tpu.vector_store %arg2[%c1_81, %c1_82, %c0_83], %103 {strides = array<i32>} : memref<5x7x128xf32, #tpu.memory_space<vmem>>, vector<1x1x128xf32>,
    %104 = vector.extract_strided_slice %91 {offsets = [2, 0], sizes = [2, 128], strides = [1, 1]} : vector<9x128xf32> to vector<2x128xf32>
    %cst_84 = arith.constant dense<0xFF800000> : vector<128xf32>
    %105 = vector.multi_reduction <maximumf>, %104, %cst_84 [0] : vector<2x128xf32> to vector<128xf32>
    %106 = vector.shape_cast %105 : vector<128xf32> to vector<1x128xf32>
    %c1_85 = arith.constant 1 : index
    %c2_86 = arith.constant 2 : index
    %c0_87 = arith.constant 0 : index
    %107 = vector.load %arg2[%c1_85, %c2_86, %c0_87] : memref<5x7x128xf32, #tpu.memory_space<vmem>>, vector<1x1x128xf32>
    %108 = vector.shape_cast %107 : vector<1x1x128xf32> to vector<1x128xf32>
    %109 = vector.shape_cast %106 : vector<1x128xf32> to vector<1x1x128xf32>
    tpu.vector_store %arg2[%c1_85, %c2_86, %c0_87], %109 {strides = array<i32>} : memref<5x7x128xf32, #tpu.memory_space<vmem>>, vector<1x1x128xf32>,
    %110 = vector.extract_strided_slice %91 {offsets = [3, 0], sizes = [3, 128], strides = [1, 1]} : vector<9x128xf32> to vector<3x128xf32>
    %cst_88 = arith.constant dense<0xFF800000> : vector<128xf32>
    %111 = vector.multi_reduction <maximumf>, %110, %cst_88 [0] : vector<3x128xf32> to vector<128xf32>
    %112 = vector.shape_cast %111 : vector<128xf32> to vector<1x128xf32>
    %c1_89 = arith.constant 1 : index
    %c3_90 = arith.constant 3 : index
    %c0_91 = arith.constant 0 : index
    %113 = vector.load %arg2[%c1_89, %c3_90, %c0_91] : memref<5x7x128xf32, #tpu.memory_space<vmem>>, vector<1x1x128xf32>
    %114 = vector.shape_cast %113 : vector<1x1x128xf32> to vector<1x128xf32>
    %115 = vector.shape_cast %112 : vector<1x128xf32> to vector<1x1x128xf32>
    tpu.vector_store %arg2[%c1_89, %c3_90, %c0_91], %115 {strides = array<i32>} : memref<5x7x128xf32, #tpu.memory_space<vmem>>, vector<1x1x128xf32>,
    %116 = vector.extract_strided_slice %91 {offsets = [5, 0], sizes = [2, 128], strides = [1, 1]} : vector<9x128xf32> to vector<2x128xf32>
    %cst_92 = arith.constant dense<0xFF800000> : vector<128xf32>
    %117 = vector.multi_reduction <maximumf>, %116, %cst_92 [0] : vector<2x128xf32> to vector<128xf32>
    %118 = vector.shape_cast %117 : vector<128xf32> to vector<1x128xf32>
    %c1_93 = arith.constant 1 : index
    %c4_94 = arith.constant 4 : index
    %c0_95 = arith.constant 0 : index
    %119 = vector.load %arg2[%c1_93, %c4_94, %c0_95] : memref<5x7x128xf32, #tpu.memory_space<vmem>>, vector<1x1x128xf32>
    %120 = vector.shape_cast %119 : vector<1x1x128xf32> to vector<1x128xf32>
    %121 = vector.shape_cast %118 : vector<1x128xf32> to vector<1x1x128xf32>
    tpu.vector_store %arg2[%c1_93, %c4_94, %c0_95], %121 {strides = array<i32>} : memref<5x7x128xf32, #tpu.memory_space<vmem>>, vector<1x1x128xf32>,
    %122 = vector.extract_strided_slice %91 {offsets = [6, 0], sizes = [2, 128], strides = [1, 1]} : vector<9x128xf32> to vector<2x128xf32>
    %cst_96 = arith.constant dense<0xFF800000> : vector<128xf32>
    %123 = vector.multi_reduction <maximumf>, %122, %cst_96 [0] : vector<2x128xf32> to vector<128xf32>
    %124 = vector.shape_cast %123 : vector<128xf32> to vector<1x128xf32>
    %c1_97 = arith.constant 1 : index
    %c5_98 = arith.constant 5 : index
    %c0_99 = arith.constant 0 : index
    %125 = vector.load %arg2[%c1_97, %c5_98, %c0_99] : memref<5x7x128xf32, #tpu.memory_space<vmem>>, vector<1x1x128xf32>
    %126 = vector.shape_cast %125 : vector<1x1x128xf32> to vector<1x128xf32>
    %127 = vector.shape_cast %124 : vector<1x128xf32> to vector<1x1x128xf32>
    tpu.vector_store %arg2[%c1_97, %c5_98, %c0_99], %127 {strides = array<i32>} : memref<5x7x128xf32, #tpu.memory_space<vmem>>, vector<1x1x128xf32>,
    %128 = vector.extract_strided_slice %91 {offsets = [7, 0], sizes = [2, 128], strides = [1, 1]} : vector<9x128xf32> to vector<2x128xf32>
    %cst_100 = arith.constant dense<0xFF800000> : vector<128xf32>
    %129 = vector.multi_reduction <maximumf>, %128, %cst_100 [0] : vector<2x128xf32> to vector<128xf32>
    %130 = vector.shape_cast %129 : vector<128xf32> to vector<1x128xf32>
    %c1_101 = arith.constant 1 : index
    %c6_102 = arith.constant 6 : index
    %c0_103 = arith.constant 0 : index
    %131 = vector.load %arg2[%c1_101, %c6_102, %c0_103] : memref<5x7x128xf32, #tpu.memory_space<vmem>>, vector<1x1x128xf32>
    %132 = vector.shape_cast %131 : vector<1x1x128xf32> to vector<1x128xf32>
    %133 = vector.shape_cast %130 : vector<1x128xf32> to vector<1x1x128xf32>
    tpu.vector_store %arg2[%c1_101, %c6_102, %c0_103], %133 {strides = array<i32>} : memref<5x7x128xf32, #tpu.memory_space<vmem>>, vector<1x1x128xf32>,
    %c2_104 = arith.constant 2 : index
    %c0_105 = arith.constant 0 : index
    %c0_106 = arith.constant 0 : index
    %134 = vector.load %arg3[%c2_104, %c0_105, %c0_106] : memref<5x9x128xf32, #tpu.memory_space<vmem>>, vector<1x9x128xf32>
    %135 = vector.shape_cast %134 : vector<1x9x128xf32> to vector<9x128xf32>
    %136 = vector.extract_strided_slice %135 {offsets = [0, 0], sizes = [2, 128], strides = [1, 1]} : vector<9x128xf32> to vector<2x128xf32>
    %cst_107 = arith.constant dense<0xFF800000> : vector<128xf32>
    %137 = vector.multi_reduction <maximumf>, %136, %cst_107 [0] : vector<2x128xf32> to vector<128xf32>
    %138 = vector.shape_cast %137 : vector<128xf32> to vector<1x128xf32>
    %c2_108 = arith.constant 2 : index
    %c0_109 = arith.constant 0 : index
    %c0_110 = arith.constant 0 : index
    %139 = vector.load %arg2[%c2_108, %c0_109, %c0_110] : memref<5x7x128xf32, #tpu.memory_space<vmem>>, vector<1x1x128xf32>
    %140 = vector.shape_cast %139 : vector<1x1x128xf32> to vector<1x128xf32>
    %141 = vector.shape_cast %138 : vector<1x128xf32> to vector<1x1x128xf32>
    tpu.vector_store %arg2[%c2_108, %c0_109, %c0_110], %141 {strides = array<i32>} : memref<5x7x128xf32, #tpu.memory_space<vmem>>, vector<1x1x128xf32>,
    %142 = vector.extract_strided_slice %135 {offsets = [1, 0], sizes = [2, 128], strides = [1, 1]} : vector<9x128xf32> to vector<2x128xf32>
    %cst_111 = arith.constant dense<0xFF800000> : vector<128xf32>
    %143 = vector.multi_reduction <maximumf>, %142, %cst_111 [0] : vector<2x128xf32> to vector<128xf32>
    %144 = vector.shape_cast %143 : vector<128xf32> to vector<1x128xf32>
    %c2_112 = arith.constant 2 : index
    %c1_113 = arith.constant 1 : index
    %c0_114 = arith.constant 0 : index
    %145 = vector.load %arg2[%c2_112, %c1_113, %c0_114] : memref<5x7x128xf32, #tpu.memory_space<vmem>>, vector<1x1x128xf32>
    %146 = vector.shape_cast %145 : vector<1x1x128xf32> to vector<1x128xf32>
    %147 = vector.shape_cast %144 : vector<1x128xf32> to vector<1x1x128xf32>
    tpu.vector_store %arg2[%c2_112, %c1_113, %c0_114], %147 {strides = array<i32>} : memref<5x7x128xf32, #tpu.memory_space<vmem>>, vector<1x1x128xf32>,
    %148 = vector.extract_strided_slice %135 {offsets = [2, 0], sizes = [2, 128], strides = [1, 1]} : vector<9x128xf32> to vector<2x128xf32>
    %cst_115 = arith.constant dense<0xFF800000> : vector<128xf32>
    %149 = vector.multi_reduction <maximumf>, %148, %cst_115 [0] : vector<2x128xf32> to vector<128xf32>
    %150 = vector.shape_cast %149 : vector<128xf32> to vector<1x128xf32>
    %c2_116 = arith.constant 2 : index
    %c2_117 = arith.constant 2 : index
    %c0_118 = arith.constant 0 : index
    %151 = vector.load %arg2[%c2_116, %c2_117, %c0_118] : memref<5x7x128xf32, #tpu.memory_space<vmem>>, vector<1x1x128xf32>
    %152 = vector.shape_cast %151 : vector<1x1x128xf32> to vector<1x128xf32>
    %153 = vector.shape_cast %150 : vector<1x128xf32> to vector<1x1x128xf32>
    tpu.vector_store %arg2[%c2_116, %c2_117, %c0_118], %153 {strides = array<i32>} : memref<5x7x128xf32, #tpu.memory_space<vmem>>, vector<1x1x128xf32>,
    %154 = vector.extract_strided_slice %135 {offsets = [3, 0], sizes = [3, 128], strides = [1, 1]} : vector<9x128xf32> to vector<3x128xf32>
    %cst_119 = arith.constant dense<0xFF800000> : vector<128xf32>
    %155 = vector.multi_reduction <maximumf>, %154, %cst_119 [0] : vector<3x128xf32> to vector<128xf32>
    %156 = vector.shape_cast %155 : vector<128xf32> to vector<1x128xf32>
    %c2_120 = arith.constant 2 : index
    %c3_121 = arith.constant 3 : index
    %c0_122 = arith.constant 0 : index
    %157 = vector.load %arg2[%c2_120, %c3_121, %c0_122] : memref<5x7x128xf32, #tpu.memory_space<vmem>>, vector<1x1x128xf32>
    %158 = vector.shape_cast %157 : vector<1x1x128xf32> to vector<1x128xf32>
    %159 = vector.shape_cast %156 : vector<1x128xf32> to vector<1x1x128xf32>
    tpu.vector_store %arg2[%c2_120, %c3_121, %c0_122], %159 {strides = array<i32>} : memref<5x7x128xf32, #tpu.memory_space<vmem>>, vector<1x1x128xf32>,
    %160 = vector.extract_strided_slice %135 {offsets = [5, 0], sizes = [2, 128], strides = [1, 1]} : vector<9x128xf32> to vector<2x128xf32>
    %cst_123 = arith.constant dense<0xFF800000> : vector<128xf32>
    %161 = vector.multi_reduction <maximumf>, %160, %cst_123 [0] : vector<2x128xf32> to vector<128xf32>
    %162 = vector.shape_cast %161 : vector<128xf32> to vector<1x128xf32>
    %c2_124 = arith.constant 2 : index
    %c4_125 = arith.constant 4 : index
    %c0_126 = arith.constant 0 : index
    %163 = vector.load %arg2[%c2_124, %c4_125, %c0_126] : memref<5x7x128xf32, #tpu.memory_space<vmem>>, vector<1x1x128xf32>
    %164 = vector.shape_cast %163 : vector<1x1x128xf32> to vector<1x128xf32>
    %165 = vector.shape_cast %162 : vector<1x128xf32> to vector<1x1x128xf32>
    tpu.vector_store %arg2[%c2_124, %c4_125, %c0_126], %165 {strides = array<i32>} : memref<5x7x128xf32, #tpu.memory_space<vmem>>, vector<1x1x128xf32>,
    %166 = vector.extract_strided_slice %135 {offsets = [6, 0], sizes = [2, 128], strides = [1, 1]} : vector<9x128xf32> to vector<2x128xf32>
    %cst_127 = arith.constant dense<0xFF800000> : vector<128xf32>
    %167 = vector.multi_reduction <maximumf>, %166, %cst_127 [0] : vector<2x128xf32> to vector<128xf32>
    %168 = vector.shape_cast %167 : vector<128xf32> to vector<1x128xf32>
    %c2_128 = arith.constant 2 : index
    %c5_129 = arith.constant 5 : index
    %c0_130 = arith.constant 0 : index
    %169 = vector.load %arg2[%c2_128, %c5_129, %c0_130] : memref<5x7x128xf32, #tpu.memory_space<vmem>>, vector<1x1x128xf32>
    %170 = vector.shape_cast %169 : vector<1x1x128xf32> to vector<1x128xf32>
    %171 = vector.shape_cast %168 : vector<1x128xf32> to vector<1x1x128xf32>
    tpu.vector_store %arg2[%c2_128, %c5_129, %c0_130], %171 {strides = array<i32>} : memref<5x7x128xf32, #tpu.memory_space<vmem>>, vector<1x1x128xf32>,
    %172 = vector.extract_strided_slice %135 {offsets = [7, 0], sizes = [2, 128], strides = [1, 1]} : vector<9x128xf32> to vector<2x128xf32>
    %cst_131 = arith.constant dense<0xFF800000> : vector<128xf32>
    %173 = vector.multi_reduction <maximumf>, %172, %cst_131 [0] : vector<2x128xf32> to vector<128xf32>
    %174 = vector.shape_cast %173 : vector<128xf32> to vector<1x128xf32>
    %c2_132 = arith.constant 2 : index
    %c6_133 = arith.constant 6 : index
    %c0_134 = arith.constant 0 : index
    %175 = vector.load %arg2[%c2_132, %c6_133, %c0_134] : memref<5x7x128xf32, #tpu.memory_space<vmem>>, vector<1x1x128xf32>
    %176 = vector.shape_cast %175 : vector<1x1x128xf32> to vector<1x128xf32>
    %177 = vector.shape_cast %174 : vector<1x128xf32> to vector<1x1x128xf32>
    tpu.vector_store %arg2[%c2_132, %c6_133, %c0_134], %177 {strides = array<i32>} : memref<5x7x128xf32, #tpu.memory_space<vmem>>, vector<1x1x128xf32>,
    %c3_135 = arith.constant 3 : index
    %c0_136 = arith.constant 0 : index
    %c0_137 = arith.constant 0 : index
    %178 = vector.load %arg3[%c3_135, %c0_136, %c0_137] : memref<5x9x128xf32, #tpu.memory_space<vmem>>, vector<1x9x128xf32>
    %179 = vector.shape_cast %178 : vector<1x9x128xf32> to vector<9x128xf32>
    %180 = vector.extract_strided_slice %179 {offsets = [0, 0], sizes = [2, 128], strides = [1, 1]} : vector<9x128xf32> to vector<2x128xf32>
    %cst_138 = arith.constant dense<0xFF800000> : vector<128xf32>
    %181 = vector.multi_reduction <maximumf>, %180, %cst_138 [0] : vector<2x128xf32> to vector<128xf32>
    %182 = vector.shape_cast %181 : vector<128xf32> to vector<1x128xf32>
    %c3_139 = arith.constant 3 : index
    %c0_140 = arith.constant 0 : index
    %c0_141 = arith.constant 0 : index
    %183 = vector.load %arg2[%c3_139, %c0_140, %c0_141] : memref<5x7x128xf32, #tpu.memory_space<vmem>>, vector<1x1x128xf32>
    %184 = vector.shape_cast %183 : vector<1x1x128xf32> to vector<1x128xf32>
    %185 = vector.shape_cast %182 : vector<1x128xf32> to vector<1x1x128xf32>
    tpu.vector_store %arg2[%c3_139, %c0_140, %c0_141], %185 {strides = array<i32>} : memref<5x7x128xf32, #tpu.memory_space<vmem>>, vector<1x1x128xf32>,
    %186 = vector.extract_strided_slice %179 {offsets = [1, 0], sizes = [2, 128], strides = [1, 1]} : vector<9x128xf32> to vector<2x128xf32>
    %cst_142 = arith.constant dense<0xFF800000> : vector<128xf32>
    %187 = vector.multi_reduction <maximumf>, %186, %cst_142 [0] : vector<2x128xf32> to vector<128xf32>
    %188 = vector.shape_cast %187 : vector<128xf32> to vector<1x128xf32>
    %c3_143 = arith.constant 3 : index
    %c1_144 = arith.constant 1 : index
    %c0_145 = arith.constant 0 : index
    %189 = vector.load %arg2[%c3_143, %c1_144, %c0_145] : memref<5x7x128xf32, #tpu.memory_space<vmem>>, vector<1x1x128xf32>
    %190 = vector.shape_cast %189 : vector<1x1x128xf32> to vector<1x128xf32>
    %191 = vector.shape_cast %188 : vector<1x128xf32> to vector<1x1x128xf32>
    tpu.vector_store %arg2[%c3_143, %c1_144, %c0_145], %191 {strides = array<i32>} : memref<5x7x128xf32, #tpu.memory_space<vmem>>, vector<1x1x128xf32>,
    %192 = vector.extract_strided_slice %179 {offsets = [2, 0], sizes = [2, 128], strides = [1, 1]} : vector<9x128xf32> to vector<2x128xf32>
    %cst_146 = arith.constant dense<0xFF800000> : vector<128xf32>
    %193 = vector.multi_reduction <maximumf>, %192, %cst_146 [0] : vector<2x128xf32> to vector<128xf32>
    %194 = vector.shape_cast %193 : vector<128xf32> to vector<1x128xf32>
    %c3_147 = arith.constant 3 : index
    %c2_148 = arith.constant 2 : index
    %c0_149 = arith.constant 0 : index
    %195 = vector.load %arg2[%c3_147, %c2_148, %c0_149] : memref<5x7x128xf32, #tpu.memory_space<vmem>>, vector<1x1x128xf32>
    %196 = vector.shape_cast %195 : vector<1x1x128xf32> to vector<1x128xf32>
    %197 = vector.shape_cast %194 : vector<1x128xf32> to vector<1x1x128xf32>
    tpu.vector_store %arg2[%c3_147, %c2_148, %c0_149], %197 {strides = array<i32>} : memref<5x7x128xf32, #tpu.memory_space<vmem>>, vector<1x1x128xf32>,
    %198 = vector.extract_strided_slice %179 {offsets = [3, 0], sizes = [3, 128], strides = [1, 1]} : vector<9x128xf32> to vector<3x128xf32>
    %cst_150 = arith.constant dense<0xFF800000> : vector<128xf32>
    %199 = vector.multi_reduction <maximumf>, %198, %cst_150 [0] : vector<3x128xf32> to vector<128xf32>
    %200 = vector.shape_cast %199 : vector<128xf32> to vector<1x128xf32>
    %c3_151 = arith.constant 3 : index
    %c3_152 = arith.constant 3 : index
    %c0_153 = arith.constant 0 : index
    %201 = vector.load %arg2[%c3_151, %c3_152, %c0_153] : memref<5x7x128xf32, #tpu.memory_space<vmem>>, vector<1x1x128xf32>
    %202 = vector.shape_cast %201 : vector<1x1x128xf32> to vector<1x128xf32>
    %203 = vector.shape_cast %200 : vector<1x128xf32> to vector<1x1x128xf32>
    tpu.vector_store %arg2[%c3_151, %c3_152, %c0_153], %203 {strides = array<i32>} : memref<5x7x128xf32, #tpu.memory_space<vmem>>, vector<1x1x128xf32>,
    %204 = vector.extract_strided_slice %179 {offsets = [5, 0], sizes = [2, 128], strides = [1, 1]} : vector<9x128xf32> to vector<2x128xf32>
    %cst_154 = arith.constant dense<0xFF800000> : vector<128xf32>
    %205 = vector.multi_reduction <maximumf>, %204, %cst_154 [0] : vector<2x128xf32> to vector<128xf32>
    %206 = vector.shape_cast %205 : vector<128xf32> to vector<1x128xf32>
    %c3_155 = arith.constant 3 : index
    %c4_156 = arith.constant 4 : index
    %c0_157 = arith.constant 0 : index
    %207 = vector.load %arg2[%c3_155, %c4_156, %c0_157] : memref<5x7x128xf32, #tpu.memory_space<vmem>>, vector<1x1x128xf32>
    %208 = vector.shape_cast %207 : vector<1x1x128xf32> to vector<1x128xf32>
    %209 = vector.shape_cast %206 : vector<1x128xf32> to vector<1x1x128xf32>
    tpu.vector_store %arg2[%c3_155, %c4_156, %c0_157], %209 {strides = array<i32>} : memref<5x7x128xf32, #tpu.memory_space<vmem>>, vector<1x1x128xf32>,
    %210 = vector.extract_strided_slice %179 {offsets = [6, 0], sizes = [2, 128], strides = [1, 1]} : vector<9x128xf32> to vector<2x128xf32>
    %cst_158 = arith.constant dense<0xFF800000> : vector<128xf32>
    %211 = vector.multi_reduction <maximumf>, %210, %cst_158 [0] : vector<2x128xf32> to vector<128xf32>
    %212 = vector.shape_cast %211 : vector<128xf32> to vector<1x128xf32>
    %c3_159 = arith.constant 3 : index
    %c5_160 = arith.constant 5 : index
    %c0_161 = arith.constant 0 : index
    %213 = vector.load %arg2[%c3_159, %c5_160, %c0_161] : memref<5x7x128xf32, #tpu.memory_space<vmem>>, vector<1x1x128xf32>
    %214 = vector.shape_cast %213 : vector<1x1x128xf32> to vector<1x128xf32>
    %215 = vector.shape_cast %212 : vector<1x128xf32> to vector<1x1x128xf32>
    tpu.vector_store %arg2[%c3_159, %c5_160, %c0_161], %215 {strides = array<i32>} : memref<5x7x128xf32, #tpu.memory_space<vmem>>, vector<1x1x128xf32>,
    %216 = vector.extract_strided_slice %179 {offsets = [7, 0], sizes = [2, 128], strides = [1, 1]} : vector<9x128xf32> to vector<2x128xf32>
    %cst_162 = arith.constant dense<0xFF800000> : vector<128xf32>
    %217 = vector.multi_reduction <maximumf>, %216, %cst_162 [0] : vector<2x128xf32> to vector<128xf32>
    %218 = vector.shape_cast %217 : vector<128xf32> to vector<1x128xf32>
    %c3_163 = arith.constant 3 : index
    %c6_164 = arith.constant 6 : index
    %c0_165 = arith.constant 0 : index
    %219 = vector.load %arg2[%c3_163, %c6_164, %c0_165] : memref<5x7x128xf32, #tpu.memory_space<vmem>>, vector<1x1x128xf32>
    %220 = vector.shape_cast %219 : vector<1x1x128xf32> to vector<1x128xf32>
    %221 = vector.shape_cast %218 : vector<1x128xf32> to vector<1x1x128xf32>
    tpu.vector_store %arg2[%c3_163, %c6_164, %c0_165], %221 {strides = array<i32>} : memref<5x7x128xf32, #tpu.memory_space<vmem>>, vector<1x1x128xf32>,
    %c4_166 = arith.constant 4 : index
    %c0_167 = arith.constant 0 : index
    %c0_168 = arith.constant 0 : index
    %222 = vector.load %arg3[%c4_166, %c0_167, %c0_168] : memref<5x9x128xf32, #tpu.memory_space<vmem>>, vector<1x9x128xf32>
    %223 = vector.shape_cast %222 : vector<1x9x128xf32> to vector<9x128xf32>
    %224 = vector.extract_strided_slice %223 {offsets = [0, 0], sizes = [2, 128], strides = [1, 1]} : vector<9x128xf32> to vector<2x128xf32>
    %cst_169 = arith.constant dense<0xFF800000> : vector<128xf32>
    %225 = vector.multi_reduction <maximumf>, %224, %cst_169 [0] : vector<2x128xf32> to vector<128xf32>
    %226 = vector.shape_cast %225 : vector<128xf32> to vector<1x128xf32>
    %c4_170 = arith.constant 4 : index
    %c0_171 = arith.constant 0 : index
    %c0_172 = arith.constant 0 : index
    %227 = vector.load %arg2[%c4_170, %c0_171, %c0_172] : memref<5x7x128xf32, #tpu.memory_space<vmem>>, vector<1x1x128xf32>
    %228 = vector.shape_cast %227 : vector<1x1x128xf32> to vector<1x128xf32>
    %229 = vector.shape_cast %226 : vector<1x128xf32> to vector<1x1x128xf32>
    tpu.vector_store %arg2[%c4_170, %c0_171, %c0_172], %229 {strides = array<i32>} : memref<5x7x128xf32, #tpu.memory_space<vmem>>, vector<1x1x128xf32>,
    %230 = vector.extract_strided_slice %223 {offsets = [1, 0], sizes = [2, 128], strides = [1, 1]} : vector<9x128xf32> to vector<2x128xf32>
    %cst_173 = arith.constant dense<0xFF800000> : vector<128xf32>
    %231 = vector.multi_reduction <maximumf>, %230, %cst_173 [0] : vector<2x128xf32> to vector<128xf32>
    %232 = vector.shape_cast %231 : vector<128xf32> to vector<1x128xf32>
    %c4_174 = arith.constant 4 : index
    %c1_175 = arith.constant 1 : index
    %c0_176 = arith.constant 0 : index
    %233 = vector.load %arg2[%c4_174, %c1_175, %c0_176] : memref<5x7x128xf32, #tpu.memory_space<vmem>>, vector<1x1x128xf32>
    %234 = vector.shape_cast %233 : vector<1x1x128xf32> to vector<1x128xf32>
    %235 = vector.shape_cast %232 : vector<1x128xf32> to vector<1x1x128xf32>
    tpu.vector_store %arg2[%c4_174, %c1_175, %c0_176], %235 {strides = array<i32>} : memref<5x7x128xf32, #tpu.memory_space<vmem>>, vector<1x1x128xf32>,
    %236 = vector.extract_strided_slice %223 {offsets = [2, 0], sizes = [2, 128], strides = [1, 1]} : vector<9x128xf32> to vector<2x128xf32>
    %cst_177 = arith.constant dense<0xFF800000> : vector<128xf32>
    %237 = vector.multi_reduction <maximumf>, %236, %cst_177 [0] : vector<2x128xf32> to vector<128xf32>
    %238 = vector.shape_cast %237 : vector<128xf32> to vector<1x128xf32>
    %c4_178 = arith.constant 4 : index
    %c2_179 = arith.constant 2 : index
    %c0_180 = arith.constant 0 : index
    %239 = vector.load %arg2[%c4_178, %c2_179, %c0_180] : memref<5x7x128xf32, #tpu.memory_space<vmem>>, vector<1x1x128xf32>
    %240 = vector.shape_cast %239 : vector<1x1x128xf32> to vector<1x128xf32>
    %241 = vector.shape_cast %238 : vector<1x128xf32> to vector<1x1x128xf32>
    tpu.vector_store %arg2[%c4_178, %c2_179, %c0_180], %241 {strides = array<i32>} : memref<5x7x128xf32, #tpu.memory_space<vmem>>, vector<1x1x128xf32>,
    %242 = vector.extract_strided_slice %223 {offsets = [3, 0], sizes = [3, 128], strides = [1, 1]} : vector<9x128xf32> to vector<3x128xf32>
    %cst_181 = arith.constant dense<0xFF800000> : vector<128xf32>
    %243 = vector.multi_reduction <maximumf>, %242, %cst_181 [0] : vector<3x128xf32> to vector<128xf32>
    %244 = vector.shape_cast %243 : vector<128xf32> to vector<1x128xf32>
    %c4_182 = arith.constant 4 : index
    %c3_183 = arith.constant 3 : index
    %c0_184 = arith.constant 0 : index
    %245 = vector.load %arg2[%c4_182, %c3_183, %c0_184] : memref<5x7x128xf32, #tpu.memory_space<vmem>>, vector<1x1x128xf32>
    %246 = vector.shape_cast %245 : vector<1x1x128xf32> to vector<1x128xf32>
    %247 = vector.shape_cast %244 : vector<1x128xf32> to vector<1x1x128xf32>
    tpu.vector_store %arg2[%c4_182, %c3_183, %c0_184], %247 {strides = array<i32>} : memref<5x7x128xf32, #tpu.memory_space<vmem>>, vector<1x1x128xf32>,
    %248 = vector.extract_strided_slice %223 {offsets = [5, 0], sizes = [2, 128], strides = [1, 1]} : vector<9x128xf32> to vector<2x128xf32>
    %cst_185 = arith.constant dense<0xFF800000> : vector<128xf32>
    %249 = vector.multi_reduction <maximumf>, %248, %cst_185 [0] : vector<2x128xf32> to vector<128xf32>
    %250 = vector.shape_cast %249 : vector<128xf32> to vector<1x128xf32>
    %c4_186 = arith.constant 4 : index
    %c4_187 = arith.constant 4 : index
    %c0_188 = arith.constant 0 : index
    %251 = vector.load %arg2[%c4_186, %c4_187, %c0_188] : memref<5x7x128xf32, #tpu.memory_space<vmem>>, vector<1x1x128xf32>
    %252 = vector.shape_cast %251 : vector<1x1x128xf32> to vector<1x128xf32>
    %253 = vector.shape_cast %250 : vector<1x128xf32> to vector<1x1x128xf32>
    tpu.vector_store %arg2[%c4_186, %c4_187, %c0_188], %253 {strides = array<i32>} : memref<5x7x128xf32, #tpu.memory_space<vmem>>, vector<1x1x128xf32>,
    %254 = vector.extract_strided_slice %223 {offsets = [6, 0], sizes = [2, 128], strides = [1, 1]} : vector<9x128xf32> to vector<2x128xf32>
    %cst_189 = arith.constant dense<0xFF800000> : vector<128xf32>
    %255 = vector.multi_reduction <maximumf>, %254, %cst_189 [0] : vector<2x128xf32> to vector<128xf32>
    %256 = vector.shape_cast %255 : vector<128xf32> to vector<1x128xf32>
    %c4_190 = arith.constant 4 : index
    %c5_191 = arith.constant 5 : index
    %c0_192 = arith.constant 0 : index
    %257 = vector.load %arg2[%c4_190, %c5_191, %c0_192] : memref<5x7x128xf32, #tpu.memory_space<vmem>>, vector<1x1x128xf32>
    %258 = vector.shape_cast %257 : vector<1x1x128xf32> to vector<1x128xf32>
    %259 = vector.shape_cast %256 : vector<1x128xf32> to vector<1x1x128xf32>
    tpu.vector_store %arg2[%c4_190, %c5_191, %c0_192], %259 {strides = array<i32>} : memref<5x7x128xf32, #tpu.memory_space<vmem>>, vector<1x1x128xf32>,
    %260 = vector.extract_strided_slice %223 {offsets = [7, 0], sizes = [2, 128], strides = [1, 1]} : vector<9x128xf32> to vector<2x128xf32>
    %cst_193 = arith.constant dense<0xFF800000> : vector<128xf32>
    %261 = vector.multi_reduction <maximumf>, %260, %cst_193 [0] : vector<2x128xf32> to vector<128xf32>
    %262 = vector.shape_cast %261 : vector<128xf32> to vector<1x128xf32>
    %c4_194 = arith.constant 4 : index
    %c6_195 = arith.constant 6 : index
    %c0_196 = arith.constant 0 : index
    %263 = vector.load %arg2[%c4_194, %c6_195, %c0_196] : memref<5x7x128xf32, #tpu.memory_space<vmem>>, vector<1x1x128xf32>
    %264 = vector.shape_cast %263 : vector<1x1x128xf32> to vector<1x128xf32>
    %265 = vector.shape_cast %262 : vector<1x128xf32> to vector<1x1x128xf32>
    tpu.vector_store %arg2[%c4_194, %c6_195, %c0_196], %265 {strides = array<i32>} : memref<5x7x128xf32, #tpu.memory_space<vmem>>, vector<1x1x128xf32>,
    return
  }
  func.func @transform_0(%arg0: i32) -> (i32, i32, i32) {
    %c0_i32 = arith.constant 0 : i32
    %c0_i32_0 = arith.constant 0 : i32
    %c0_i32_1 = arith.constant 0 : i32
    return %c0_i32, %c0_i32_0, %arg0 : i32, i32, i32
  }
  func.func @transform_1(%arg0: i32) -> (i32, i32, i32) {
    %c0_i32 = arith.constant 0 : i32
    %c0_i32_0 = arith.constant 0 : i32
    %c0_i32_1 = arith.constant 0 : i32
    return %c0_i32, %c0_i32_0, %arg0 : i32, i32, i32
  }
}

</mosaic_0001>

<bundles_post_ra>
// kernel: tpu_custom_call.1
= control target key start
LH: loop header
LB: loop body
LE: loop exit
PB: predicated region body
PF: predicated region fallthrough
CT: control target
= control target key end

     0   :  { %vm70_vm0 = vcmask 1041408   ;;  %vm79_vm1 = vcmask 1042433   ;;  %vm88_vm2 = vcmask 1043458   ;;  %vm97_vm3 = vcmask 1045507   ;;  %s610_s0 = inlined_call_operand.vmem [shape: f32[8,9,128], index: 0, kind: input, shape index: {}]   ;;  %s611_s1 = inlined_call_operand.hbm [shape: f32[5,7,128], index: 1, kind: output, shape index: {}]  }
   0x1   :  { %v9_v0 = vld [vmem:[%s610_s0] sm:$0xff]  ;;  %v398_v1 = vld [vmem:[%s610_s0 + $0x10] sm:$0xff]  ;;  %v10_v2 = vld [vmem:[%s610_s0 + $0x8] sm:$0x1]  ;;  %vm106_vm4 = vcmask 1046533  }
   0x2   :  { %v471_v3 = vmax.f32 %v9_v0, %v398_v1  ;;  %v399_v4 = vld [vmem:[%s610_s0 + $0x18] sm:$0x1]  ;;  %v406_v5 = vld [vmem:[%s610_s0 + $0x30] sm:$0xff]  ;;  %v408_v6 = vld [vmem:[%s610_s0 + $0x40] sm:$0xff] }
   0x3   :  { %v15_v7 = vmax.f32 %v10_v2, %v399_v4  ;;  %v407_v8 = vld [vmem:[%s610_s0 + $0x38] sm:$0x1]  ;;  %v409_v9 = vld [vmem:[%s610_s0 + $0x48] sm:$0x1]  ;;  %v416_v10 = vld [vmem:[%s610_s0 + $0x60] sm:$0xff]  ;;  %v491_v11 = vmax.f32 %v406_v5, %v408_v6 }
   0x4   :  { %v39_v12 = vmax.f32 %v407_v8, %v409_v9  ;;  %v418_v13 = vld [vmem:[%s610_s0 + $0x70] sm:$0xff]  ;;  %v417_v14 = vld [vmem:[%s610_s0 + $0x68] sm:$0x1]  ;;  %v419_v15 = vld [vmem:[%s610_s0 + $0x78] sm:$0x1]  ;;  %v71_v25 = vsel %vm70_vm0, %v471_v3, -inf }
   0x5   :  { %17 = vst [vmem:[#allocation2] sm:$0x1] %v15_v7  ;;  %v64_v16 = vmax.f32 %v417_v14, %v419_v15  ;;  %v402_v17 = vld [vmem:[%s610_s0 + $0x20] sm:$0xff]  ;;  %v401_v18 = vld [vmem:[%s610_s0 + $0x18] sm:$0x1]  ;;  %v412_v19 = vld [vmem:[%s610_s0 + $0x50] sm:$0xff]  ;;  %v511_v20 = vmax.f32 %v416_v10, %v418_v13 }
   0x6   :  { %v23_v21 = vmax.f32 %v398_v1, %v402_v17  ;;  %v403_v22 = vld [vmem:[%s610_s0 + $0x28] sm:$0x1]  ;;  %v405_v23 = vld [vmem:[%s610_s0 + $0x38] sm:$0x1]  ;;  %v48_v24 = vmax.f32 %v408_v6, %v412_v19  ;;  %42 = vst [vmem:[#allocation2 + $0x28] sm:$0x1] %v39_v12 }
   0x7   :  { %v24_v26 = vmax.f32 %v401_v18, %v403_v22  ;;  %v411_v27 = vld [vmem:[%s610_s0 + $0x48] sm:$0x1]  ;;  %v413_v28 = vld [vmem:[%s610_s0 + $0x58] sm:$0x1]  ;;  %v72_v33 = vrot.slane %v71_v25, 4 }
   0x8   :  { %v527_v29 = vmax.f32 %v23_v21, %v406_v5  ;;  %v529_v30 = vmax.f32 %v48_v24, %v416_v10  ;;  %v49_v31 = vmax.f32 %v411_v27, %v413_v28  ;;  %v415_v32 = vld [vmem:[%s610_s0 + $0x68] sm:$0x1] }
   0x9   :  { %6 = vsyncpa [#allocation4], 0  ;;  %67 = vst [vmem:[#allocation2 + $0x38] sm:$0x1] %v64_v16  ;;  %v29_v34 = vmax.f32 %v24_v26, %v405_v23  ;;  %v80_v35 = vsel %vm79_vm1, %v471_v3, -inf  ;;  %v89_v36 = vsel %vm88_vm2, %v471_v3, -inf  ;;  %v73_v39 = vmax.f32 %v71_v25, %v72_v33 }
   0xa   :  { %v98_v37 = vsel %vm97_vm3, %v471_v3, -inf  ;;  %v54_v38 = vmax.f32 %v49_v31, %v415_v32  ;;  %v81_v40 = vrot.slane %v80_v35, 4  ;;  %v90_v41 = vrot.slane %v89_v36, 4  ;;  %s449_s0 = smov [#allocation3]   ;;  %s386_s20 = sshll.u32 %s611_s1, 4  ;;  %s387_s20 = int_to_ptr.hbm [resolvable:$true] %s386_s20 }
   0xb   :  { %32 = vst [vmem:[#allocation2 + $0x10] sm:$0x1] %v29_v34  ;;  %v99_v42 = vrot.slane %v98_v37, 4  ;;  %v107_v43 = vsel %vm106_vm4, %v471_v3, -inf  ;;  %vm115_vm5 = vcmask 1047558   ;;  %v199_v44 = vsel %vm70_vm0, %v491_v11, -inf }
   0xc   :  { %v74_v45 = vrot.slane %v73_v39, 2  ;;  %v82_v46 = vmax.f32 %v80_v35, %v81_v40  ;;  %v91_v47 = vmax.f32 %v89_v36, %v90_v41  ;;  %v108_v48 = vrot.slane %v107_v43, 4  ;;  %57 = vst [vmem:[#allocation2 + $0x20] sm:$0x1] %v54_v38  ;;  %s384_s17 = sshll.u32 %s449_s0, 4  ;;  %s450_s21 = smov 128   ;;  %s385_s17 = int_to_ptr.vmem [resolvable:$true] %s384_s17 }
   0xd   :  { %v100_v49 = vmax.f32 %v98_v37, %v99_v42  ;;  %v116_v50 = vsel %vm115_vm5, %v471_v3, -inf  ;;  %v200_v51 = vrot.slane %v199_v44, 4  ;;  %v208_v52 = vsel %vm79_vm1, %v491_v11, -inf  ;;  %s451_s22 = smov 8  }
   0xe   :  { %v75_v53 = vmax.f32 %v73_v39, %v74_v45  ;;  %v83_v54 = vrot.slane %v82_v46, 2  ;;  %v92_v55 = vrot.slane %v91_v47, 2  ;;  %v109_v56 = vmax.f32 %v107_v43, %v108_v48 }
   0xf   :  { %v101_v57 = vrot.slane %v100_v49, 2  ;;  %v117_v58 = vrot.slane %v116_v50, 4  ;;  %v201_v59 = vmax.f32 %v199_v44, %v200_v51  ;;  %v209_v60 = vrot.slane %v208_v52, 4 }
  0x10   :  { %v76_v61 = vrot.slane %v75_v53, 1  ;;  %v84_v62 = vmax.f32 %v82_v46, %v83_v54  ;;  %v93_v63 = vmax.f32 %v91_v47, %v92_v55  ;;  %v110_v0 = vrot.slane %v109_v56, 2 }
  0x11   :  { %v102_v1 = vmax.f32 %v100_v49, %v101_v57  ;;  %v118_v2 = vmax.f32 %v116_v50, %v117_v58  ;;  %v202_v4 = vrot.slane %v201_v59, 2  ;;  %v210_v5 = vmax.f32 %v208_v52, %v209_v60 }
  0x12   :  { %v77_v6 = vmax.f32 %v75_v53, %v76_v61  ;;  %v85_v7 = vrot.slane %v84_v62, 1  ;;  %v94_v8 = vrot.slane %v93_v63, 1  ;;  %v111_v9 = vmax.f32 %v109_v56, %v110_v0 }
  0x13   :  { %v103_v10 = vrot.slane %v102_v1, 1  ;;  %v119_v12 = vrot.slane %v118_v2, 2  ;;  %v203_v13 = vmax.f32 %v201_v59, %v202_v4  ;;  %v211_v14 = vrot.slane %v210_v5, 2 }
  0x14   :  { %78 = vst [vmem:[#allocation3] sm:$0x1] %v77_v6  ;;  %v86_v15 = vmax.f32 %v84_v62, %v85_v7  ;;  %v95_v16 = vmax.f32 %v93_v63, %v94_v8  ;;  %v112_v17 = vrot.slane %v111_v9, 1  ;;  %v216_v18 = vsel %vm88_vm2, %v491_v11, -inf }
  0x15   :  { %v104_v19 = vmax.f32 %v102_v1, %v103_v10  ;;  %v120_v21 = vmax.f32 %v118_v2, %v119_v12  ;;  %v204_v22 = vrot.slane %v203_v13, 1  ;;  %v212_v23 = vmax.f32 %v210_v5, %v211_v14 }
  0x16   :  { %87 = vst [vmem:[#allocation3 + $0x1] sm:$0x1] %v86_v15  ;;  %v113_v24 = vmax.f32 %v111_v9, %v112_v17  ;;  %v217_v25 = vrot.slane %v216_v18, 4  ;;  %v224_v26 = vsel %vm97_vm3, %v491_v11, -inf  ;;  %v232_v27 = vsel %vm106_vm4, %v491_v11, -inf }
  0x17   :  { %96 = vst [vmem:[#allocation3 + $0x2] sm:$0x1] %v95_v16  ;;  %v121_v28 = vrot.slane %v120_v21, 1  ;;  %v205_v31 = vmax.f32 %v203_v13, %v204_v22  ;;  %v213_v32 = vrot.slane %v212_v23, 1  ;;  %v225_v33 = vrot.slane %v224_v26, 4 }
  0x18   :  { %105 = vst [vmem:[#allocation3 + $0x3] sm:$0x1] %v104_v19  ;;  %v218_v34 = vmax.f32 %v216_v18, %v217_v25  ;;  %v233_v35 = vrot.slane %v232_v27, 4  ;;  %v240_v36 = vsel %vm115_vm5, %v491_v11, -inf  ;;  %v321_v37 = vsel %vm70_vm0, %v511_v20, -inf }
  0x19   :  { %114 = vst [vmem:[#allocation3 + $0x4] sm:$0x1] %v113_v24  ;;  %v122_v38 = vmax.f32 %v120_v21, %v121_v28  ;;  %v214_v39 = vmax.f32 %v212_v23, %v213_v32  ;;  %v226_v40 = vmax.f32 %v224_v26, %v225_v33  ;;  %v241_v41 = vrot.slane %v240_v36, 4  ;;  %v69_v16 = vld [vmem:[#allocation2] sm:$0x1] }
  0x1a   :  { %207 = vst [vmem:[#allocation3 + $0x10] sm:$0x1] %v205_v31  ;;  %v219_v42 = vrot.slane %v218_v34, 2  ;;  %v234_v43 = vmax.f32 %v232_v27, %v233_v35  ;;  %v322_v44 = vrot.slane %v321_v37, 4  ;;  %v330_v45 = vsel %vm79_vm1, %v511_v20, -inf }
  0x1b   :  { %123 = vst [vmem:[#allocation3 + $0x5] sm:$0x1] %v122_v38  ;;  %v227_v46 = vrot.slane %v226_v40, 2  ;;  %v242_v47 = vmax.f32 %v240_v36, %v241_v41  ;;  %v331_v48 = vrot.slane %v330_v45, 4  ;;  %v338_v49 = vsel %vm88_vm2, %v511_v20, -inf }
  0x1c   :  { %215 = vst [vmem:[#allocation3 + $0x11] sm:$0x1] %v214_v39  ;;  %v220_v50 = vmax.f32 %v218_v34, %v219_v42  ;;  %v235_v51 = vrot.slane %v234_v43, 2  ;;  %v323_v52 = vmax.f32 %v321_v37, %v322_v44  ;;  %v339_v53 = vrot.slane %v338_v49, 4 }
  0x1d   :  { %v228_v54 = vmax.f32 %v226_v40, %v227_v46  ;;  %v243_v55 = vrot.slane %v242_v47, 2  ;;  %v332_v56 = vmax.f32 %v330_v45, %v331_v48  ;;  %v346_v57 = vsel %vm97_vm3, %v511_v20, -inf }
  0x1e   :  { %v221_v58 = vrot.slane %v220_v50, 1  ;;  %v236_v59 = vmax.f32 %v234_v43, %v235_v51  ;;  %v324_v60 = vrot.slane %v323_v52, 2  ;;  %v340_v61 = vmax.f32 %v338_v49, %v339_v53 }
  0x1f   :  { %v229_v62 = vrot.slane %v228_v54, 1  ;;  %v244_v63 = vmax.f32 %v242_v47, %v243_v55  ;;  %v333_v0 = vrot.slane %v332_v56, 2  ;;  %v347_v1 = vrot.slane %v346_v57, 4 }
  0x20   :  { %v222_v2 = vmax.f32 %v220_v50, %v221_v58  ;;  %v237_v4 = vrot.slane %v236_v59, 1  ;;  %v325_v5 = vmax.f32 %v323_v52, %v324_v60  ;;  %v341_v6 = vrot.slane %v340_v61, 2 }
  0x21   :  { %v230_v7 = vmax.f32 %v228_v54, %v229_v62  ;;  %v245_v8 = vrot.slane %v244_v63, 1  ;;  %v334_v9 = vmax.f32 %v332_v56, %v333_v0  ;;  %v348_v10 = vmax.f32 %v346_v57, %v347_v1 }
  0x22   :  { %223 = vst [vmem:[#allocation3 + $0x12] sm:$0x1] %v222_v2  ;;  %v238_v12 = vmax.f32 %v236_v59, %v237_v4  ;;  %v326_v13 = vrot.slane %v325_v5, 1  ;;  %v342_v14 = vmax.f32 %v340_v61, %v341_v6  ;;  %v354_v15 = vsel %vm106_vm4, %v511_v20, -inf }
  0x23   :  { %231 = vst [vmem:[#allocation3 + $0x13] sm:$0x1] %v230_v7  ;;  %v246_v17 = vmax.f32 %v244_v63, %v245_v8  ;;  %v335_v18 = vrot.slane %v334_v9, 1  ;;  %v349_v19 = vrot.slane %v348_v10, 2  ;;  %v355_v21 = vrot.slane %v354_v15, 4 }
  0x24   :  { %239 = vst [vmem:[#allocation3 + $0x14] sm:$0x1] %v238_v12  ;;  %v327_v22 = vmax.f32 %v325_v5, %v326_v13  ;;  %v343_v23 = vrot.slane %v342_v14, 1  ;;  %v362_v24 = vsel %vm115_vm5, %v511_v20, -inf  ;;  %vm124_vm6 = vcmask 1047559  }
  0x25   :  { %247 = vst [vmem:[#allocation3 + $0x15] sm:$0x1] %v246_v17  ;;  %v336_v25 = vmax.f32 %v334_v9, %v335_v18  ;;  %v350_v26 = vmax.f32 %v348_v10, %v349_v19  ;;  %v356_v27 = vmax.f32 %v354_v15, %v355_v21  ;;  %v363_v28 = vrot.slane %v362_v24, 4  ;;  %v198_v10 = vld [vmem:[#allocation2 + $0x28] sm:$0x1] }
  0x26   :  { %329 = vst [vmem:[#allocation3 + $0x20] sm:$0x1] %v327_v22  ;;  %v344_v31 = vmax.f32 %v342_v14, %v343_v23  ;;  %v125_v32 = vsel %vm124_vm6, %v471_v3, -inf  ;;  %vm126_vm7 = vcmask 1040384   ;;  %v138_v33 = vsel %vm70_vm0, %v527_v29, -inf }
  0x27   :  { %337 = vst [vmem:[#allocation3 + $0x21] sm:$0x1] %v336_v25  ;;  %v351_v34 = vrot.slane %v350_v26, 1  ;;  %v357_v35 = vrot.slane %v356_v27, 2  ;;  %v364_v36 = vmax.f32 %v362_v24, %v363_v28  ;;  %v127_v37 = vsel %vm126_vm7, %v69_v16, -inf }
  0x28   :  { %345 = vst [vmem:[#allocation3 + $0x22] sm:$0x1] %v344_v31  ;;  %v128_v38 = vmax.f32 %v125_v32, %v127_v37  ;;  %v139_v39 = vrot.slane %v138_v33, 4  ;;  %v147_v40 = vsel %vm79_vm1, %v527_v29, -inf  ;;  %v155_v41 = vsel %vm88_vm2, %v527_v29, -inf }
  0x29   :  { %v352_v3 = vmax.f32 %v350_v26, %v351_v34  ;;  %v358_v42 = vmax.f32 %v356_v27, %v357_v35  ;;  %v365_v43 = vrot.slane %v364_v36, 2  ;;  %v148_v44 = vrot.slane %v147_v40, 4 }
  0x2a   :  { %v129_v45 = vrot.slane %v128_v38, 4  ;;  %v140_v46 = vmax.f32 %v138_v33, %v139_v39  ;;  %v156_v47 = vrot.slane %v155_v41, 4  ;;  %v163_v48 = vsel %vm97_vm3, %v527_v29, -inf }
  0x2b   :  { %353 = vst [vmem:[#allocation3 + $0x23] sm:$0x1] %v352_v3  ;;  %v359_v49 = vrot.slane %v358_v42, 1  ;;  %v366_v50 = vmax.f32 %v364_v36, %v365_v43  ;;  %v149_v51 = vmax.f32 %v147_v40, %v148_v44  ;;  %v164_v52 = vrot.slane %v163_v48, 4 }
  0x2c   :  { %v130_v53 = vmax.f32 %v128_v38, %v129_v45  ;;  %v141_v54 = vrot.slane %v140_v46, 2  ;;  %v157_v55 = vmax.f32 %v155_v41, %v156_v47  ;;  %v171_v56 = vsel %vm106_vm4, %v527_v29, -inf }
  0x2d   :  { %v360_v57 = vmax.f32 %v358_v42, %v359_v49  ;;  %v367_v58 = vrot.slane %v366_v50, 1  ;;  %v150_v59 = vrot.slane %v149_v51, 2  ;;  %v165_v60 = vmax.f32 %v163_v48, %v164_v52 }
  0x2e   :  { %v131_v61 = vrot.slane %v130_v53, 2  ;;  %v142_v62 = vmax.f32 %v140_v46, %v141_v54  ;;  %v158_v63 = vrot.slane %v157_v55, 2  ;;  %v172_v0 = vrot.slane %v171_v56, 4 }
  0x2f   :  { %361 = vst [vmem:[#allocation3 + $0x24] sm:$0x1] %v360_v57  ;;  %v368_v1 = vmax.f32 %v366_v50, %v367_v58  ;;  %v151_v2 = vmax.f32 %v149_v51, %v150_v59  ;;  %v166_v4 = vrot.slane %v165_v60, 2  ;;  %v179_v5 = vsel %vm115_vm5, %v527_v29, -inf }
  0x30   :  { %v132_v6 = vmax.f32 %v130_v53, %v131_v61  ;;  %v143_v7 = vrot.slane %v142_v62, 1  ;;  %v159_v8 = vmax.f32 %v157_v55, %v158_v63  ;;  %v173_v9 = vmax.f32 %v171_v56, %v172_v0  ;;  %v320_v61 = vld [vmem:[#allocation2 + $0x38] sm:$0x1] }
  0x31   :  { %369 = vst [vmem:[#allocation3 + $0x25] sm:$0x1] %v368_v1  ;;  %v152_v12 = vrot.slane %v151_v2, 1  ;;  %v167_v13 = vmax.f32 %v165_v60, %v166_v4  ;;  %v180_v14 = vrot.slane %v179_v5, 4  ;;  %v248_v15 = vsel %vm124_vm6, %v491_v11, -inf }
  0x32   :  { %v133_v16 = vrot.slane %v132_v6, 1  ;;  %v144_v17 = vmax.f32 %v142_v62, %v143_v7  ;;  %v160_v18 = vrot.slane %v159_v8, 1  ;;  %v174_v19 = vrot.slane %v173_v9, 2 }
  0x33   :  { %v153_v21 = vmax.f32 %v151_v2, %v152_v12  ;;  %v168_v22 = vrot.slane %v167_v13, 1  ;;  %v181_v23 = vmax.f32 %v179_v5, %v180_v14  ;;  %v249_v24 = vsel %vm126_vm7, %v198_v10, -inf  ;;  %v137_v12 = vld [vmem:[#allocation2 + $0x10] sm:$0x1] }
  0x34   :  { %v134_v25 = vmax.f32 %v132_v6, %v133_v16  ;;  %146 = vst [vmem:[#allocation3 + $0x8] sm:$0x1] %v144_v17  ;;  %v161_v26 = vmax.f32 %v159_v8, %v160_v18  ;;  %v175_v27 = vmax.f32 %v173_v9, %v174_v19  ;;  %v250_v28 = vmax.f32 %v248_v15, %v249_v24 }
  0x35   :  { %154 = vst [vmem:[#allocation3 + $0x9] sm:$0x1] %v153_v21  ;;  %v169_v31 = vmax.f32 %v167_v13, %v168_v22  ;;  %v182_v32 = vrot.slane %v181_v23, 2  ;;  %v260_v11 = vsel %vm70_vm0, %v529_v30, -inf  ;;  %v269_v33 = vsel %vm79_vm1, %v529_v30, -inf }
  0x36   :  { %135 = vst [vmem:[#allocation3 + $0x6] sm:$0x1] %v134_v25  ;;  %v176_v34 = vrot.slane %v175_v27, 1  ;;  %v251_v35 = vrot.slane %v250_v28, 4  ;;  %v261_v36 = vrot.slane %v260_v11, 4  ;;  %v270_v37 = vrot.slane %v269_v33, 4 }
  0x37   :  { %162 = vst [vmem:[#allocation3 + $0xa] sm:$0x1] %v161_v26  ;;  %v183_v38 = vmax.f32 %v181_v23, %v182_v32  ;;  %v277_v39 = vsel %vm88_vm2, %v529_v30, -inf  ;;  %v285_v40 = vsel %vm97_vm3, %v529_v30, -inf  ;;  %v293_v41 = vsel %vm106_vm4, %v529_v30, -inf }
  0x38   :  { %170 = vst [vmem:[#allocation3 + $0xb] sm:$0x1] %v169_v31  ;;  %v177_v3 = vmax.f32 %v175_v27, %v176_v34  ;;  %v252_v42 = vmax.f32 %v250_v28, %v251_v35  ;;  %v262_v43 = vmax.f32 %v260_v11, %v261_v36  ;;  %v271_v44 = vmax.f32 %v269_v33, %v270_v37  ;;  %v259_v22 = vld [vmem:[#allocation2 + $0x20] sm:$0x1] }
  0x39   :  { %v184_v45 = vrot.slane %v183_v38, 1  ;;  %v278_v46 = vrot.slane %v277_v39, 4  ;;  %v286_v47 = vrot.slane %v285_v40, 4  ;;  %v294_v48 = vrot.slane %v293_v41, 4 }
  0x3a   :  { %178 = vst [vmem:[#allocation3 + $0xc] sm:$0x1] %v177_v3  ;;  %v253_v49 = vrot.slane %v252_v42, 2  ;;  %v263_v50 = vrot.slane %v262_v43, 2  ;;  %v272_v51 = vrot.slane %v271_v44, 2  ;;  %v301_v52 = vsel %vm115_vm5, %v529_v30, -inf }
  0x3b   :  { %v185_v53 = vmax.f32 %v183_v38, %v184_v45  ;;  %v279_v54 = vmax.f32 %v277_v39, %v278_v46  ;;  %v287_v55 = vmax.f32 %v285_v40, %v286_v47  ;;  %v295_v56 = vmax.f32 %v293_v41, %v294_v48 }
  0x3c   :  { %v254_v57 = vmax.f32 %v252_v42, %v253_v49  ;;  %v264_v58 = vmax.f32 %v262_v43, %v263_v50  ;;  %v273_v59 = vmax.f32 %v271_v44, %v272_v51  ;;  %v302_v60 = vrot.slane %v301_v52, 4 }
  0x3d   :  { %186 = vst [vmem:[#allocation3 + $0xd] sm:$0x1] %v185_v53  ;;  %v280_v62 = vrot.slane %v279_v54, 2  ;;  %v288_v63 = vrot.slane %v287_v55, 2  ;;  %v296_v0 = vrot.slane %v295_v56, 2  ;;  %v370_v1 = vsel %vm124_vm6, %v511_v20, -inf }
  0x3e   :  { %v255_v2 = vrot.slane %v254_v57, 1  ;;  %v265_v4 = vrot.slane %v264_v58, 1  ;;  %v274_v5 = vrot.slane %v273_v59, 1  ;;  %v303_v6 = vmax.f32 %v301_v52, %v302_v60 }
  0x3f   :  { %v281_v7 = vmax.f32 %v279_v54, %v280_v62  ;;  %v289_v8 = vmax.f32 %v287_v55, %v288_v63  ;;  %v297_v9 = vmax.f32 %v295_v56, %v296_v0  ;;  %v371_v10 = vsel %vm126_vm7, %v320_v61, -inf }
  0x40   :  { %v256_v13 = vmax.f32 %v254_v57, %v255_v2  ;;  %v266_v14 = vmax.f32 %v264_v58, %v265_v4  ;;  %v275_v15 = vmax.f32 %v273_v59, %v274_v5  ;;  %v304_v16 = vrot.slane %v303_v6, 2 }
  0x41   :  { %v282_v17 = vrot.slane %v281_v7, 1  ;;  %v290_v18 = vrot.slane %v289_v8, 1  ;;  %v298_v19 = vrot.slane %v297_v9, 1  ;;  %v372_v21 = vmax.f32 %v370_v1, %v371_v10 }
  0x42   :  { %257 = vst [vmem:[#allocation3 + $0x16] sm:$0x1] %v256_v13  ;;  %v305_v20 = vmax.f32 %v303_v6, %v304_v16  ;;  %v187_v23 = vsel %vm124_vm6, %v527_v29, -inf  ;;  %v188_v24 = vsel %vm126_vm7, %v137_v12, -inf  ;;  %v309_v25 = vsel %vm124_vm6, %v529_v30, -inf }
  0x43   :  { %268 = vst [vmem:[#allocation3 + $0x18] sm:$0x1] %v266_v14  ;;  %v283_v26 = vmax.f32 %v281_v7, %v282_v17  ;;  %v291_v27 = vmax.f32 %v289_v8, %v290_v18  ;;  %v299_v28 = vmax.f32 %v297_v9, %v298_v19  ;;  %v373_v31 = vrot.slane %v372_v21, 4 }
  0x44   :  { %276 = vst [vmem:[#allocation3 + $0x19] sm:$0x1] %v275_v15  ;;  %v306_v32 = vrot.slane %v305_v20, 1  ;;  %v189_v11 = vmax.f32 %v187_v23, %v188_v24  ;;  %v310_v33 = vsel %vm126_vm7, %v259_v22, -inf }
  0x45   :  { %284 = vst [vmem:[#allocation3 + $0x1a] sm:$0x1] %v283_v26  ;;  %v374_v34 = vmax.f32 %v372_v21, %v373_v31  ;;  %v311_v35 = vmax.f32 %v309_v25, %v310_v33 }
  0x46   :  { %292 = vst [vmem:[#allocation3 + $0x1b] sm:$0x1] %v291_v27  ;;  %v307_v29 = vmax.f32 %v305_v20, %v306_v32  ;;  %v190_v36 = vrot.slane %v189_v11, 4 }
  0x47   :  { %300 = vst [vmem:[#allocation3 + $0x1c] sm:$0x1] %v299_v28  ;;  %v375_v37 = vrot.slane %v374_v34, 2  ;;  %v312_v38 = vrot.slane %v311_v35, 4 }
  0x48   :  { %308 = vst [vmem:[#allocation3 + $0x1d] sm:$0x1] %v307_v29  ;;  %v191_v30 = vmax.f32 %v189_v11, %v190_v36 }
  0x49   :  { %v376_v39 = vmax.f32 %v374_v34, %v375_v37  ;;  %v313_v40 = vmax.f32 %v311_v35, %v312_v38 }
  0x4a   :  { %v192_v41 = vrot.slane %v191_v30, 2 }
  0x4b   :  { %v377_v3 = vrot.slane %v376_v39, 1  ;;  %v314_v42 = vrot.slane %v313_v40, 2 }
  0x4c   :  { %v193_v43 = vmax.f32 %v191_v30, %v192_v41 }
  0x4d   :  { %v378_v44 = vmax.f32 %v376_v39, %v377_v3  ;;  %v315_v45 = vmax.f32 %v313_v40, %v314_v42 }
  0x4e   :  { %v194_v46 = vrot.slane %v193_v43, 1 }
  0x4f   :  { %379 = vst [vmem:[#allocation3 + $0x26] sm:$0x1] %v378_v44  ;;  %v316_v47 = vrot.slane %v315_v45, 1 }
  0x50   :  { %v195_v48 = vmax.f32 %v193_v43, %v194_v46 }
  0x51   :  { %v317_v49 = vmax.f32 %v315_v45, %v316_v47 }
  0x52   :  { %196 = vst [vmem:[#allocation3 + $0xe] sm:$0x1] %v195_v48 }
  0x53   :  { %318 = vst [vmem:[#allocation3 + $0x1e] sm:$0x1] %v317_v49 }
  0x54   :  { %392 = dma.vmem_to_hbm [thread:$0]  %s385_s17, 640, %s387_s20, [#allocation4], %s450_s21, %s450_s21, %s451_s22  }
  0x55   :  { %447 = dma.done.wait [#allocation4], 640  }
  0x56   :  { %448 = vsyncadd [#allocation4], 4294966656 }
  0x57   :  { %397 = vsyncpa [#allocation4], 1 }

</bundles_post_ra>
